<compile_context>
chip_gen: v6e
topology: v6e:2x2x1
jax: 0.10.0
libtpu: 0.0.40
codegen_flags: <defaults>
</compile_context>

<pallas_src>
import jax
import jax.numpy as jnp
from jax.experimental import pallas as pl
from jax.experimental.pallas import tpu as pltpu


def _landmark_kernel_flat(x_ref, w_ref, b_ref, o_ref):
    # x_ref: (C, THW)  w_ref: (C, OC)  b_ref: (1, OC)  o_ref: (THW*OC,)
    # Contract over C (LHS dim 0 vs RHS dim 0) -> (THW, OC): transposed-LHS
    # MXU feed, no explicit relayout of the streamed activation tile.
    acc = jax.lax.dot_general(
        x_ref[...], w_ref[...],
        dimension_numbers=(((0,), (0,)), ((), ())),
        preferred_element_type=jnp.float32,
    )
    # Flatten while still f32 (hw-major, oc-minor == PyTorch's permuted order),
    # then cast on store. This makes the output block lane-dense -> unmasked
    # vst + one contiguous writeback DMA.
    o_ref[...] = (acc + b_ref[...]).reshape(o_ref.shape).astype(o_ref.dtype)


def _landmark_kernel_2d(x_ref, w_ref, b_ref, o_ref):
    # Fallback variant: o_ref: (THW, OC) (lane-padded stores, known-good).
    acc = jax.lax.dot_general(
        x_ref[...], w_ref[...],
        dimension_numbers=(((0,), (0,)), ((), ())),
        preferred_element_type=jnp.float32,
    )
    o_ref[...] = (acc + b_ref[...]).astype(o_ref.dtype)


def landmark_head(x_nchw, weight, bias, num_anchors=3, thw=None):
    """Forward pass of LandmarkHead.

    x_nchw: (N, C, H, W)           float32 or bfloat16
    weight: (OC, C)                conv1x1 weight squeezed from (OC, C, 1, 1)
    bias:   (OC,)
    returns (N, H*W*num_anchors, 10) in x's dtype
    """
    N, C, H, W = x_nchw.shape
    OC = weight.shape[0]
    assert OC == num_anchors * 10
    HW = H * W
    dtype = x_nchw.dtype
    itemsize = jnp.dtype(dtype).itemsize

    # Native-layout view: merging H,W is a free reshape (no HBM pass).
    x_nc_hw = x_nchw.reshape(N, C, HW)
    w_t = weight.T.astype(dtype)           # (C, OC)
    b2d = bias.reshape(1, OC).astype(dtype)

    # ---- tile size along HW -------------------------------------------------
    # Keep x double-buffer + out double-buffer (conservatively assuming the
    # lane-padded fallback) under ~20 MiB so every generation's scoped VMEM
    # (with the explicit limit below) has headroom.
    if thw is None:
        per_row = (2 * C + 2 * max(OC, 128)) * itemsize
        thw = 512
        for cand in (8192, 6144, 4096, 3072, 2048, 1024, 512):
            if cand * per_row <= 20 * 1024 * 1024:
                thw = cand
                break
    if HW <= thw:
        if N == 1 and HW >= 256:
            # v7x has 2 TensorCores: make sure the "parallel" grid has >= 2
            # steps instead of collapsing to a single block.
            thw = (((HW + 1) // 2) + 127) // 128 * 128
        else:
            thw = HW                         # full extent: always a legal block
    else:
        thw = max(128, (thw // 128) * 128)   # lane-aligned; ragged tail is OK

    grid = (N, pl.cdiv(HW, thw))

    cost = pl.CostEstimate(
        flops=2 * N * HW * C * OC,
        transcendentals=0,
        bytes_accessed=(x_nc_hw.size + w_t.size + b2d.size + N * HW * OC) * itemsize,
    )
    vmem_est = thw * (2 * C + 2 * max(OC, 128)) * itemsize + (C + 128) * OC * itemsize
    cparams = pltpu.CompilerParams(
        dimension_semantics=("parallel", "parallel"),
        vmem_limit_bytes=int(min(max(vmem_est + (8 << 20), 16 << 20), 30 << 20)),
    )

    in_specs = [
        # x tile: squeeze N, full C, THW-wide slice of HW.
        pl.BlockSpec((None, C, thw), lambda n, j: (n, 0, j)),
        # weight / bias: VMEM-resident across the whole grid.
        pl.BlockSpec((C, OC), lambda n, j: (0, 0)),
        pl.BlockSpec((1, OC), lambda n, j: (0, 0)),
    ]

    def run_flat():
        return pl.pallas_call(
            _landmark_kernel_flat,
            out_shape=jax.ShapeDtypeStruct((N, HW * OC), dtype),
            grid_spec=pltpu.PrefetchScalarGridSpec(
                num_scalar_prefetch=0,
                grid=grid,
                in_specs=in_specs,
                out_specs=pl.BlockSpec((None, thw * OC), lambda n, j: (n, j)),
            ),
            compiler_params=cparams,
            cost_estimate=cost,
        )(x_nc_hw, w_t, b2d)

    def run_2d():
        return pl.pallas_call(
            _landmark_kernel_2d,
            out_shape=jax.ShapeDtypeStruct((N, HW, OC), dtype),
            grid_spec=pltpu.PrefetchScalarGridSpec(
                num_scalar_prefetch=0,
                grid=grid,
                in_specs=in_specs,
                out_specs=pl.BlockSpec((None, thw, OC), lambda n, j: (n, j, 0)),
            ),
            compiler_params=cparams,
            cost_estimate=cost,
        )(x_nc_hw, w_t, b2d)

    # Prefer the lane-dense flat-output variant; if Mosaic rejects the
    # in-kernel (THW, OC) -> (THW*OC,) reshape on this toolchain, fall back to
    # the lane-padded output (correct, just slower on the store path).
    # (Called eagerly here so lowering errors are catchable.)
    try:
        out_flat = run_flat()
    except Exception:
        out_flat = run_2d().reshape(N, HW * OC)

    # (N, HW*OC) -> (N, HW*anchors, 10): same element order as PyTorch's
    # permute(0,2,3,1).contiguous().view(N, -1, 10); contiguous split, free.
    return out_flat.reshape(N, HW * num_anchors, 10)


if __name__ == "__main__":
    # Small, deterministic configuration (module default is inchannels=512;
    # scaled down here).
    N, C, H, W = 2, 64, 16, 16
    num_anchors = 3
    OC = num_anchors * 10

    key = jax.random.PRNGKey(0)
    kx, kw, kb, kx2 = jax.random.split(key, 4)

    x = jax.random.normal(kx, (N, C, H, W), dtype=jnp.float32)
    weight = jax.random.normal(kw, (OC, C), dtype=jnp.float32) * 0.05
    bias = jax.random.normal(kb, (OC,), dtype=jnp.float32) * 0.05

    def ref_fn(xv, wv, bv):
        r = jnp.einsum(
            "nchw,oc->nhwo",
            xv.astype(jnp.float32), wv.astype(jnp.float32),
        ) + bv.astype(jnp.float32)
        return r.reshape(xv.shape[0], -1, 10)

    # 1) Base check.
    out = jax.block_until_ready(landmark_head(x, weight, bias, num_anchors))
    ref = ref_fn(x, weight, bias)
    assert out.shape == (N, H * W * num_anchors, 10), out.shape
    assert jnp.allclose(out, ref, atol=1e-4, rtol=1e-4)

    # 2) Ragged tiles (HW % thw != 0) + N==1 two-tile split path.
    x2 = jax.random.normal(kx2, (1, C, 20, 20), dtype=jnp.float32)
    ref2 = ref_fn(x2, weight, bias)
    out2a = jax.block_until_ready(landmark_head(x2, weight, bias, num_anchors))
    out2b = jax.block_until_ready(landmark_head(x2, weight, bias, num_anchors, thw=128))
    assert out2a.shape == (1, 400 * num_anchors, 10)
    assert jnp.allclose(out2a, ref2, atol=1e-4, rtol=1e-4)
    assert jnp.allclose(out2b, ref2, atol=1e-4, rtol=1e-4)

    # 3) bf16 pass-through (producer-emits-bf16 optimization path).
    xb = x.astype(jnp.bfloat16)
    wb = weight.astype(jnp.bfloat16)
    bb = bias.astype(jnp.bfloat16)
    outb = jax.block_until_ready(landmark_head(xb, wb, bb, num_anchors))
    refb = ref_fn(xb, wb, bb)
    assert outb.dtype == jnp.bfloat16
    assert jnp.allclose(outb.astype(jnp.float32), refb, atol=2e-2, rtol=2e-2)

    print("KERNEL_OK")
</pallas_src>

<mosaic_0001>
module attributes {stable_mosaic.version = 11 : i64} {
  func.func @_landmark_kernel_2d(%arg0: i32, %arg1: i32, %arg2: memref<1x64x256xf32, #tpu.memory_space<vmem>>, %arg3: memref<64x30xf32, #tpu.memory_space<vmem>>, %arg4: memref<1x30xf32, #tpu.memory_space<vmem>>, %arg5: memref<1x256x30xf32, #tpu.memory_space<vmem>>) attributes {dimension_semantics = [#tpu.dimension_semantics<parallel>, #tpu.dimension_semantics<parallel>], iteration_bounds = array<i64: 2, 1>, scalar_prefetch = 0 : i64, scratch_operands = 0 : i64, tpu.core_type = #tpu.core_type<tc>, window_params = [{transform_indices = @transform_0, window_bounds = array<i64: 1, 64, 256>}, {pipeline_mode = #tpu.pipeline_mode<synchronous>, transform_indices = @transform_1, window_bounds = array<i64: 64, 30>}, {pipeline_mode = #tpu.pipeline_mode<synchronous>, transform_indices = @transform_2, window_bounds = array<i64: 1, 30>}, {transform_indices = @transform_3, window_bounds = array<i64: 1, 256, 30>}]} {
    %c0 = arith.constant 0 : index
    %c0_0 = arith.constant 0 : index
    %c0_1 = arith.constant 0 : index
    %0 = vector.load %arg2[%c0, %c0_0, %c0_1] : memref<1x64x256xf32, #tpu.memory_space<vmem>>, vector<1x64x256xf32>
    %1 = vector.shape_cast %0 : vector<1x64x256xf32> to vector<64x256xf32>
    %c0_2 = arith.constant 0 : index
    %c0_3 = arith.constant 0 : index
    %2 = vector.load %arg3[%c0_2, %c0_3] : memref<64x30xf32, #tpu.memory_space<vmem>>, vector<64x30xf32>
    %cst = arith.constant dense<0.000000e+00> : vector<256x30xf32>
    %3 = tpu.matmul %1, %2, %cst {dimension_numbers = #tpu.dot_dimension_numbers<[0], [0], [1], [1], [0, 1, 1, 1], [], []>} : vector<64x256xf32>, vector<64x30xf32>, vector<256x30xf32> -> vector<256x30xf32>
    %c0_4 = arith.constant 0 : index
    %c0_5 = arith.constant 0 : index
    %4 = vector.load %arg4[%c0_4, %c0_5] : memref<1x30xf32, #tpu.memory_space<vmem>>, vector<1x30xf32>
    %5 = vector.broadcast %4 : vector<1x30xf32> to vector<256x30xf32>
    %6 = arith.addf %3, %5 : vector<256x30xf32>
    %c0_6 = arith.constant 0 : index
    %c0_7 = arith.constant 0 : index
    %c0_8 = arith.constant 0 : index
    %7 = vector.load %arg5[%c0_6, %c0_7, %c0_8] : memref<1x256x30xf32, #tpu.memory_space<vmem>>, vector<1x256x30xf32>
    %8 = vector.shape_cast %7 : vector<1x256x30xf32> to vector<256x30xf32>
    %9 = vector.shape_cast %6 : vector<256x30xf32> to vector<1x256x30xf32>
    tpu.vector_store %arg5[%c0_6, %c0_7, %c0_8], %9 {strides = array<i32>} : memref<1x256x30xf32, #tpu.memory_space<vmem>>, vector<1x256x30xf32>,
    return
  }
  func.func @transform_0(%arg0: i32, %arg1: i32) -> (i32, i32, i32) {
    %c0_i32 = arith.constant 0 : i32
    %c0_i32_0 = arith.constant 0 : i32
    return %arg0, %c0_i32, %arg1 : i32, i32, i32
  }
  func.func @transform_1(%arg0: i32, %arg1: i32) -> (i32, i32) {
    %c0_i32 = arith.constant 0 : i32
    %c0_i32_0 = arith.constant 0 : i32
    %c0_i32_1 = arith.constant 0 : i32
    return %c0_i32, %c0_i32_0 : i32, i32
  }
  func.func @transform_2(%arg0: i32, %arg1: i32) -> (i32, i32) {
    %c0_i32 = arith.constant 0 : i32
    %c0_i32_0 = arith.constant 0 : i32
    %c0_i32_1 = arith.constant 0 : i32
    return %c0_i32, %c0_i32_0 : i32, i32
  }
  func.func @transform_3(%arg0: i32, %arg1: i32) -> (i32, i32, i32) {
    %c0_i32 = arith.constant 0 : i32
    %c0_i32_0 = arith.constant 0 : i32
    return %arg0, %arg1, %c0_i32 : i32, i32, i32
  }
}

</mosaic_0001>

<bundles_post_ra>
// kernel: tpu_custom_call.1
= control target key start
LH: loop header
LB: loop body
LE: loop exit
PB: predicated region body
PF: predicated region fallthrough
CT: control target
= control target key end

     0   :  { %8 = vsyncpa [#allocation3], 0  ;;  %s1366_s0 = inlined_call_operand.hbm [shape: f32[2,64,256], index: 0, kind: input, shape index: {}]   ;;  %s1367_s1 = inlined_call_operand.vmem [shape: f32[64,30], index: 1, kind: input, shape index: {}]   ;;  %s1368_s2 = inlined_call_operand.vmem [shape: f32[1,30], index: 2, kind: input, shape index: {}]   ;;  %s1369_s3 = inlined_call_operand.vmem [shape: f32[2,256,30], index: 3, kind: output, shape index: {}]  }
   0x1   :  { %10 = vsyncpa [#allocation3 + $0x1], 0  ;;  %s1093_s12 = smov 0   ;;  %s1095_s13 = smov 0  }
   0x2   :  { %s1097_s14 = smov 0   ;;  %s1099_s15 = smov 0  }
   0x3   :  { %s1101_s16 = smov 0   ;;  %s1103_s17 = smov 0  }
   0x4 LB: > { %s764_s18 = sadd.s32 4294967295, %s1068_s17   ;;  %s28_s19 = sadd.s32 1, %s1064_s16  ;;  %s1068_s17 = sphi %s1103_s17, %s16_s17   ;;  %s1064_s16 = sphi %s1101_s16, %s1377_s16   ;;  %s1060_s15 = sphi %s1099_s15, %s1376_s15   ;;  %s1056_s14 = sphi %s1097_s14, %s1375_s14   ;;  %s1052_s13 = sphi %s1095_s13, %s1374_s13   ;;  %s1048_s12 = sphi %s1093_s12, %s1373_s12  }
   0x5   : > { %p30_p0 = scmp.ge.s32.totalorder %s28_s19, 2  ;;  %s37_s20 = sadd.s32 1, %s1056_s14 }
   0x6   : > { %p44_p1 = scmp.ne.s32.totalorder %s1056_s14, %s1052_s13  ;;  %p45_p2 = scmp.eq.s32.totalorder %s1068_s17, 0 }
   0x7   : > { %s1379_s19 = smov (%p30_p0, %s28_s19), 0  ;;  %p50_p4 = scmp.ne.s32.totalorder %s1052_s13, %s1048_s12 }
   0x8   : > { %p1129_p3 = por %p45_p2, %p44_p1  ;;  %s32_s22 = ssub.s32 %s1064_s16, %s1379_s19 }
   0x9   : > { %p51_p5 = scmp.eq.s32.totalorder %s764_s18, 0  ;;  %p35_p6 = scmp.eq.s32.totalorder %s32_s22, 0 }
   0xa   : > { %p938_p8 = scmp.lt.s32.totalorder %s1068_s17, 2  ;;  %s150_s25 = sand.u32 1, %s1056_s14  }
   0xb   : > { %p1136_p7 = por %p51_p5, %p50_p4  ;;  %s810_s26 = sshll.u32 %s1064_s16, 11 }
   0xc   : > { %s1142_s24 = scalar_select %p35_p6, %s1056_s14, %s37_s20  }
   0xd   : > { %s768_s27 = sshll.u32 %s150_s25, 7  ;;  %s162_s30 = scalar_lea.hbm %s1366_s0, %s810_s26 }
   0xe   : > { %s154_s4 = scalar_lea.vmem [#allocation2], %s768_s27  ;;  %p1151_p9 = pnand %p938_p8, %p1129_p3 }
   0xf   : > { %s163_s5 = sshll.u32 %s154_s4, 4  ;;  %s151_s7 = scalar_lea.sflag [#allocation3], %s150_s25  ;;  %s164_s5 = int_to_ptr.vmem [resolvable:$true] %s163_s5 }
  0x10   : > { %p992_p10 = pneg %p1151_p9  ;;  %s1003_s8 = scalar_lea.vmem %s164_s5, 2048 }
  0x11   : > { %p1004_p11 = scmp.ne.s32.totalorder %s164_s5, %s1003_s8  ;;  %s1070_s9 = smov [#allocation2]  }
  0x12   : > { %s1008_s10 = sshll.u32 %s1070_s9, 4  ;;  %s1009_s10 = int_to_ptr.vmem [resolvable:$false] %s1008_s10 }
  0x13   : > { %p1006_p12 = pnand %p1004_p11, %p992_p10  ;;  %s1010_s11 = scalar_lea.vmem %s1009_s10, 4096 }
  0x14   : > { %p1011_p0 = scmp.lt.s32.totalorder %s164_s5, %s1009_s10  ;;  %p1012_p1 = scmp.lt.s32.totalorder %s1010_s11, %s1003_s8 }
  0x15   : > { %p1007_p13 = pneg %p1006_p12 }
  0x16   : > { %p1013_p2 = por %p1012_p1, %p1011_p0 }
  0x18   : > { %p1014_p3 = pnand %p1013_p2, %p1007_p13 }
  0x1a   : > { %1017 = shalt.err (!%p1014_p3)
}
  0x1b   : > { %s1071_s12 = smov 256   ;;  %s1072_s18 = smov 16  }
  0x1c   : > { %937 = dma.hbm_to_vmem [thread:$0]  (!%p1151_p9), %s162_s30, 2048, %s164_s5, %s151_s7, %s1071_s12, %s1071_s12, %s1072_s18  }
  0x1d   : > { %p771_p4 = scmp.ge.s32.totalorder %s1068_s17, 1  ;;  %p171_p5 = scmp.lt.s32.totalorder %s1068_s17, 3 }
  0x1f   : > { %p172_p6 = pnand %p771_p4, %p171_p5 }
  0x20   : > { %s177_s20 = sand.u32 (!%p172_p6), 1, %s1052_s13  }
  0x21   : > { %175 = sbr.rel (%p172_p6) target bundleno = 423 (0x1a7), region = 32  ;;  %s772_s21 = sshll.u32 (!%p172_p6), %s177_s20, 7 }
  0x22   : > { %s178_s22 = scalar_lea.sflag (!%p172_p6), [#allocation3], %s177_s20  ;;  %s1162_s25 = scalar_lea.vmem (!%p172_p6), [#allocation2], %s772_s21 }
  0x26   : > { %1043 = dma.done.wait (%p1136_p7), %s178_s22, 2048  }
  0x27   : > { %1045 = vsyncadd (%p1136_p7), %s178_s22, 4294965248  ;;  %v220_v0 = vld [vmem:[%s1162_s25 + $0x8] sm:$0xff]  ;;  %v219_v1 = vld [vmem:[%s1162_s25] sm:$0xff]  ;;  %vm314_vm0 = vcmask 523264   ;;  %p210_p7 = scmp.lt.s32.totalorder %s1060_s15, 1  ;;  %vm636_vm1 = vcmask 244736  }
  0x28   : > { %282 = vxpose.xlu1.b32.start [1/8] (short) %v220_v0, 128  ;;  %250 = vxpose.xlu0.b32.start [1/8] (short) %v219_v1, 128  ;;  %v222_v2 = vld [vmem:[%s1162_s25 + $0x18] sm:$0xff]  ;;  %v221_v3 = vld [vmem:[%s1162_s25 + $0x10] sm:$0xff]  ;;  %v224_v6 = vld [vmem:[%s1162_s25 + $0x28] sm:$0xff] }
  0x29   : > { %v242_v4 = vld [vmem:[%s1367_s1 + $0x38] sm:$0xff]  ;;  %v241_v5 = vld [vmem:[%s1367_s1 + $0x30] sm:$0xff]  ;;  %v223_v7 = vld [vmem:[%s1162_s25 + $0x20] sm:$0xff]  ;;  %s1381_s15 = smov (!%p210_p7, %s1060_s15), 1 }
  0x2a   : > { %852 = vmatprep.subr.mxu0 %v242_v4  ;;  %916 = vmatprep.subr.mxu1 %v242_v4  ;;  %v240_v8 = vld [vmem:[%s1367_s1 + $0x28] sm:$0xff]  ;;  %v226_v9 = vld [vmem:[%s1162_s25 + $0x38] sm:$0xff]  ;;  %v225_v10 = vld [vmem:[%s1162_s25 + $0x30] sm:$0xff]  ;;  %s811_s20 = sshll.u32 %s1381_s15, 8 }
  0x2b   : > { %853 = vmatpush3.msra.mxu0 %v242_v4  ;;  %924 = vmatpush3.msra.mxu1 %v242_v4  ;;  %v239_v11 = vld [vmem:[%s1367_s1 + $0x20] sm:$0xff]  ;;  %v238_v12 = vld [vmem:[%s1367_s1 + $0x18] sm:$0xff]  ;;  %v228_v13 = vld [vmem:[%s1162_s25 + $0x48] sm:$0xff]  ;;  %s1250_s27 = scalar_lea.vmem %s1369_s3, %s811_s20 }
  0x2c   : > { %283 = vxpose.xlu1.b32.cont [2/8] (short) %v222_v2, 128  ;;  %251 = vxpose.xlu0.b32.cont [2/8] (short) %v221_v3, 128  ;;  %v227_v14 = vld [vmem:[%s1162_s25 + $0x40] sm:$0xff]  ;;  %v237_v15 = vld [vmem:[%s1367_s1 + $0x10] sm:$0xff]  ;;  %v230_v16 = vld [vmem:[%s1162_s25 + $0x58] sm:$0xff] }
  0x2d   : > { %854 = vmatprep.subr.mxu0 %v241_v5  ;;  %917 = vmatprep.subr.mxu1 %v241_v5  ;;  %v229_v17 = vld [vmem:[%s1162_s25 + $0x50] sm:$0xff]  ;;  %v236_v18 = vld [vmem:[%s1367_s1 + $0x8] sm:$0xff]  ;;  %v235_v19 = vld [vmem:[%s1367_s1] sm:$0xff] }
  0x2e   : > { %855 = vmatpush3.msra.mxu0 %v241_v5  ;;  %925 = vmatpush3.msra.mxu1 %v241_v5  ;;  %v232_v20 = vld [vmem:[%s1162_s25 + $0x68] sm:$0xff]  ;;  %v231_v21 = vld [vmem:[%s1162_s25 + $0x60] sm:$0xff]  ;;  %v234_v22 = vld [vmem:[%s1162_s25 + $0x78] sm:$0xff] }
  0x2f   : > { %856 = vmatprep.subr.mxu0 %v240_v8  ;;  %918 = vmatprep.subr.mxu1 %v240_v8  ;;  %v233_v23 = vld [vmem:[%s1162_s25 + $0x70] sm:$0xff]  ;;  %v1245_v56 = vld [vmem:[%s1368_s2] ss:$0 sm:$0xff] }
  0x30   : > { %284 = vxpose.xlu1.b32.cont [3/8] (short) %v224_v6, 128  ;;  %252 = vxpose.xlu0.b32.cont [3/8] (short) %v223_v7, 128 }
  0x31   : > { %857 = vmatpush3.msra.mxu0 %v240_v8  ;;  %926 = vmatpush3.msra.mxu1 %v240_v8 }
  0x32   : > { %858 = vmatprep.subr.mxu0 %v239_v11  ;;  %919 = vmatprep.subr.mxu1 %v239_v11 }
  0x33   : > { %859 = vmatpush3.msra.mxu0 %v239_v11  ;;  %927 = vmatpush3.msra.mxu1 %v239_v11 }
  0x34   : > { %285 = vxpose.xlu1.b32.cont [4/8] (short) %v226_v9, 128  ;;  %253 = vxpose.xlu0.b32.cont [4/8] (short) %v225_v10, 128 }
  0x35   : > { %860 = vmatprep.subr.mxu0 %v238_v12  ;;  %920 = vmatprep.subr.mxu1 %v238_v12 }
  0x36   : > { %861 = vmatpush3.msra.mxu0 %v238_v12  ;;  %928 = vmatpush3.msra.mxu1 %v238_v12 }
  0x37   : > { %862 = vmatprep.subr.mxu0 %v237_v15  ;;  %921 = vmatprep.subr.mxu1 %v237_v15 }
  0x38   : > { %286 = vxpose.xlu1.b32.cont [5/8] (short) %v228_v13, 128  ;;  %254 = vxpose.xlu0.b32.cont [5/8] (short) %v227_v14, 128 }
  0x39   : > { %863 = vmatpush3.msra.mxu0 %v237_v15  ;;  %929 = vmatpush3.msra.mxu1 %v237_v15 }
  0x3a   : > { %864 = vmatprep.subr.mxu0 %v236_v18  ;;  %922 = vmatprep.subr.mxu1 %v236_v18 }
  0x3b   : > { %865 = vmatpush3.msra.mxu0 %v236_v18  ;;  %930 = vmatpush3.msra.mxu1 %v236_v18 }
  0x3c   : > { %287 = vxpose.xlu1.b32.cont [6/8] (short) %v230_v16, 128  ;;  %255 = vxpose.xlu0.b32.cont [6/8] (short) %v229_v17, 128 }
  0x3d   : > { %866 = vmatprep.subr.mxu0 %v235_v19  ;;  %923 = vmatprep.subr.mxu1 %v235_v19 }
  0x3e   : > { %867 = vmatpush3.msra.mxu0 %v235_v19  ;;  %931 = vmatpush3.msra.mxu1 %v235_v19 }
  0x40   : > { %288 = vxpose.xlu1.b32.cont [7/8] (short) %v232_v20, 128  ;;  %256 = vxpose.xlu0.b32.cont [7/8] (short) %v231_v21, 128 }
  0x44   : > { %289 = vxpose.xlu1.b32.end [8/8] (short) %v234_v22, 128  ;;  %257 = vxpose.xlu0.b32.end [8/8] (short) %v233_v23, 128 }
  0xa4   : > { %v298_v24 = vpop.trf.xlu1  ;;  %v266_v25 = vpop.trf.xlu0 }
  0xa5   : > { %868 = vmatprep.mubr.msk.f32.mxu0 %vm314_vm0, %v266_v25  ;;  %892 = vmatprep.mubr.msk.f32.mxu1 %vm314_vm0, %v298_v24 }
  0xa8   : > { %v299_v26 = vpop.trf.xlu1  ;;  %v267_v27 = vpop.trf.xlu0 }
  0xa9   : > { %869 = vmatmul.mubr.msk.f32.vlgmr.msra.gmra.mxu0 %vm314_vm0, %v267_v27  ;;  %893 = vmatmul.mubr.msk.f32.vlgmr.msra.gmra.mxu1 %vm314_vm0, %v299_v26 }
  0xac   : > { %v300_v28 = vpop.trf.xlu1  ;;  %v268_v29 = vpop.trf.xlu0 }
  0xad   : > { %871 = vmatprep.mubr.msk.f32.mxu0 %vm314_vm0, %v268_v29  ;;  %895 = vmatprep.mubr.msk.f32.mxu1 %vm314_vm0, %v300_v28 }
  0xb0   : > { %v301_v30 = vpop.trf.xlu1  ;;  %v269_v31 = vpop.trf.xlu0 }
  0xb1   : > { %872 = vmatmul.mubr.msk.f32.gmra.mxu0 %vm314_vm0, %v269_v31  ;;  %896 = vmatmul.mubr.msk.f32.gmra.mxu1 %vm314_vm0, %v301_v30 }
  0xb4   : > { %v302_v32 = vpop.trf.xlu1  ;;  %v270_v33 = vpop.trf.xlu0 }
  0xb5   : > { %874 = vmatprep.mubr.msk.f32.mxu0 %vm314_vm0, %v270_v33  ;;  %898 = vmatprep.mubr.msk.f32.mxu1 %vm314_vm0, %v302_v32 }
  0xb8   : > { %v303_v34 = vpop.trf.xlu1  ;;  %v271_v35 = vpop.trf.xlu0 }
  0xb9   : > { %875 = vmatmul.mubr.msk.f32.gmra.mxu0 %vm314_vm0, %v271_v35  ;;  %899 = vmatmul.mubr.msk.f32.gmra.mxu1 %vm314_vm0, %v303_v34 }
  0xbc   : > { %v304_v36 = vpop.trf.xlu1  ;;  %v272_v37 = vpop.trf.xlu0 }
  0xbd   : > { %877 = vmatprep.mubr.msk.f32.mxu0 %vm314_vm0, %v272_v37  ;;  %901 = vmatprep.mubr.msk.f32.mxu1 %vm314_vm0, %v304_v36 }
  0xc0   : > { %v305_v38 = vpop.trf.xlu1  ;;  %v273_v39 = vpop.trf.xlu0 }
  0xc1   : > { %878 = vmatmul.mubr.msk.f32.gmra.mxu0 %vm314_vm0, %v273_v39  ;;  %902 = vmatmul.mubr.msk.f32.gmra.mxu1 %vm314_vm0, %v305_v38 }
  0xc4   : > { %v306_v40 = vpop.trf.xlu1  ;;  %v274_v41 = vpop.trf.xlu0 }
  0xc5   : > { %880 = vmatprep.mubr.msk.f32.mxu0 %vm314_vm0, %v274_v41  ;;  %904 = vmatprep.mubr.msk.f32.mxu1 %vm314_vm0, %v306_v40 }
  0xc8   : > { %v307_v42 = vpop.trf.xlu1  ;;  %v275_v43 = vpop.trf.xlu0 }
  0xc9   : > { %881 = vmatmul.mubr.msk.f32.gmra.mxu0 %vm314_vm0, %v275_v43  ;;  %905 = vmatmul.mubr.msk.f32.gmra.mxu1 %vm314_vm0, %v307_v42 }
  0xcc   : > { %v308_v44 = vpop.trf.xlu1  ;;  %v276_v45 = vpop.trf.xlu0 }
  0xcd   : > { %883 = vmatprep.mubr.msk.f32.mxu0 %vm314_vm0, %v276_v45  ;;  %907 = vmatprep.mubr.msk.f32.mxu1 %vm314_vm0, %v308_v44 }
  0xd0   : > { %v309_v46 = vpop.trf.xlu1  ;;  %v277_v47 = vpop.trf.xlu0 }
  0xd1   : > { %884 = vmatmul.mubr.msk.f32.gmra.mxu0 %vm314_vm0, %v277_v47  ;;  %908 = vmatmul.mubr.msk.f32.gmra.mxu1 %vm314_vm0, %v309_v46 }
  0xd4   : > { %v310_v48 = vpop.trf.xlu1  ;;  %v278_v49 = vpop.trf.xlu0 }
  0xd5   : > { %886 = vmatprep.mubr.msk.f32.mxu0 %vm314_vm0, %v278_v49  ;;  %910 = vmatprep.mubr.msk.f32.mxu1 %vm314_vm0, %v310_v48 }
  0xd8   : > { %v311_v50 = vpop.trf.xlu1  ;;  %v279_v51 = vpop.trf.xlu0 }
  0xd9   : > { %887 = vmatmul.mubr.msk.f32.gmra.mxu0 %vm314_vm0, %v279_v51  ;;  %911 = vmatmul.mubr.msk.f32.gmra.mxu1 %vm314_vm0, %v311_v50 }
  0xdc   : > { %v312_v52 = vpop.trf.xlu1  ;;  %v280_v53 = vpop.trf.xlu0 }
  0xdd   : > { %889 = vmatprep.mubr.msk.f32.mxu0 %vm314_vm0, %v280_v53  ;;  %913 = vmatprep.mubr.msk.f32.mxu1 %vm314_vm0, %v312_v52 }
  0xe0   : > { %v313_v54 = vpop.trf.xlu1  ;;  %v281_v55 = vpop.trf.xlu0 }
  0xe1   : > { %890 = vmatmul.mubr.msk.f32.gmra.mxu0 %vm314_vm0, %v281_v55  ;;  %914 = vmatmul.mubr.msk.f32.gmra.mxu1 %vm314_vm0, %v313_v54 }
 0x169   : > { %v870_v57 = vpop.f32.mrf.mxu0  ;;  %v894_v58 = vpop.f32.mrf.mxu1 }
 0x16a   : > { %v483_v59 = vadd.f32 %v870_v57, %v1245_v56  ;;  %v563_v60 = vadd.f32 %v894_v58, %v1245_v56 }
 0x16b   : > { %v477_v61 = vpop.f32.mrf.mxu0  ;;  %v557_v62 = vpop.f32.mrf.mxu1 }
 0x16c   : > { %638 = vst.msk [vmem:[%s1250_s27 + $0x8] sm:$0xff] %vm636_vm1, %v483_v59  ;;  %654 = vst.msk [vmem:[%s1250_s27 + $0x88] sm:$0xff] %vm636_vm1, %v563_v60  ;;  %v478_v63 = vadd.f32 %v1245_v56, %v477_v61  ;;  %v558_v0 = vadd.f32 %v1245_v56, %v557_v62 }
 0x16e   : > { %637 = vst.msk [vmem:[%s1250_s27] sm:$0xff] %vm636_vm1, %v478_v63  ;;  %653 = vst.msk [vmem:[%s1250_s27 + $0x80] sm:$0xff] %vm636_vm1, %v558_v0 }
 0x171   : > { %v873_v1 = vpop.f32.mrf.mxu0  ;;  %v897_v2 = vpop.f32.mrf.mxu1 }
 0x172   : > { %v493_v3 = vadd.f32 %v873_v1, %v1245_v56  ;;  %v573_v4 = vadd.f32 %v897_v2, %v1245_v56 }
 0x173   : > { %v487_v5 = vpop.f32.mrf.mxu0  ;;  %v567_v6 = vpop.f32.mrf.mxu1 }
 0x174   : > { %640 = vst.msk [vmem:[%s1250_s27 + $0x18] sm:$0xff] %vm636_vm1, %v493_v3  ;;  %656 = vst.msk [vmem:[%s1250_s27 + $0x98] sm:$0xff] %vm636_vm1, %v573_v4  ;;  %v488_v7 = vadd.f32 %v1245_v56, %v487_v5  ;;  %v568_v8 = vadd.f32 %v1245_v56, %v567_v6 }
 0x176   : > { %639 = vst.msk [vmem:[%s1250_s27 + $0x10] sm:$0xff] %vm636_vm1, %v488_v7  ;;  %655 = vst.msk [vmem:[%s1250_s27 + $0x90] sm:$0xff] %vm636_vm1, %v568_v8 }
 0x179   : > { %v876_v9 = vpop.f32.mrf.mxu0  ;;  %v900_v10 = vpop.f32.mrf.mxu1 }
 0x17a   : > { %v503_v11 = vadd.f32 %v876_v9, %v1245_v56  ;;  %v583_v12 = vadd.f32 %v900_v10, %v1245_v56 }
 0x17b   : > { %v497_v13 = vpop.f32.mrf.mxu0  ;;  %v577_v14 = vpop.f32.mrf.mxu1 }
 0x17c   : > { %642 = vst.msk [vmem:[%s1250_s27 + $0x28] sm:$0xff] %vm636_vm1, %v503_v11  ;;  %658 = vst.msk [vmem:[%s1250_s27 + $0xa8] sm:$0xff] %vm636_vm1, %v583_v12  ;;  %v498_v15 = vadd.f32 %v1245_v56, %v497_v13  ;;  %v578_v16 = vadd.f32 %v1245_v56, %v577_v14 }
 0x17e   : > { %641 = vst.msk [vmem:[%s1250_s27 + $0x20] sm:$0xff] %vm636_vm1, %v498_v15  ;;  %657 = vst.msk [vmem:[%s1250_s27 + $0xa0] sm:$0xff] %vm636_vm1, %v578_v16 }
 0x181   : > { %v879_v17 = vpop.f32.mrf.mxu0  ;;  %v903_v18 = vpop.f32.mrf.mxu1 }
 0x182   : > { %v513_v19 = vadd.f32 %v879_v17, %v1245_v56  ;;  %v593_v20 = vadd.f32 %v903_v18, %v1245_v56 }
 0x183   : > { %v507_v21 = vpop.f32.mrf.mxu0  ;;  %v587_v22 = vpop.f32.mrf.mxu1 }
 0x184   : > { %644 = vst.msk [vmem:[%s1250_s27 + $0x38] sm:$0xff] %vm636_vm1, %v513_v19  ;;  %660 = vst.msk [vmem:[%s1250_s27 + $0xb8] sm:$0xff] %vm636_vm1, %v593_v20  ;;  %v508_v23 = vadd.f32 %v1245_v56, %v507_v21  ;;  %v588_v24 = vadd.f32 %v1245_v56, %v587_v22 }
 0x186   : > { %643 = vst.msk [vmem:[%s1250_s27 + $0x30] sm:$0xff] %vm636_vm1, %v508_v23  ;;  %659 = vst.msk [vmem:[%s1250_s27 + $0xb0] sm:$0xff] %vm636_vm1, %v588_v24 }
 0x189   : > { %v882_v25 = vpop.f32.mrf.mxu0  ;;  %v906_v26 = vpop.f32.mrf.mxu1 }
 0x18a   : > { %v523_v27 = vadd.f32 %v882_v25, %v1245_v56  ;;  %v603_v28 = vadd.f32 %v906_v26, %v1245_v56 }
 0x18b   : > { %v517_v29 = vpop.f32.mrf.mxu0  ;;  %v597_v30 = vpop.f32.mrf.mxu1 }
 0x18c   : > { %646 = vst.msk [vmem:[%s1250_s27 + $0x48] sm:$0xff] %vm636_vm1, %v523_v27  ;;  %662 = vst.msk [vmem:[%s1250_s27 + $0xc8] sm:$0xff] %vm636_vm1, %v603_v28  ;;  %v518_v31 = vadd.f32 %v1245_v56, %v517_v29  ;;  %v598_v32 = vadd.f32 %v1245_v56, %v597_v30 }
 0x18e   : > { %645 = vst.msk [vmem:[%s1250_s27 + $0x40] sm:$0xff] %vm636_vm1, %v518_v31  ;;  %661 = vst.msk [vmem:[%s1250_s27 + $0xc0] sm:$0xff] %vm636_vm1, %v598_v32 }
 0x191   : > { %v885_v33 = vpop.f32.mrf.mxu0  ;;  %v909_v34 = vpop.f32.mrf.mxu1 }
 0x192   : > { %v533_v35 = vadd.f32 %v885_v33, %v1245_v56  ;;  %v613_v36 = vadd.f32 %v909_v34, %v1245_v56 }
 0x193   : > { %v527_v37 = vpop.f32.mrf.mxu0  ;;  %v607_v38 = vpop.f32.mrf.mxu1 }
 0x194   : > { %648 = vst.msk [vmem:[%s1250_s27 + $0x58] sm:$0xff] %vm636_vm1, %v533_v35  ;;  %664 = vst.msk [vmem:[%s1250_s27 + $0xd8] sm:$0xff] %vm636_vm1, %v613_v36  ;;  %v528_v39 = vadd.f32 %v1245_v56, %v527_v37  ;;  %v608_v40 = vadd.f32 %v1245_v56, %v607_v38 }
 0x196   : > { %647 = vst.msk [vmem:[%s1250_s27 + $0x50] sm:$0xff] %vm636_vm1, %v528_v39  ;;  %663 = vst.msk [vmem:[%s1250_s27 + $0xd0] sm:$0xff] %vm636_vm1, %v608_v40 }
 0x199   : > { %v888_v41 = vpop.f32.mrf.mxu0  ;;  %v912_v42 = vpop.f32.mrf.mxu1 }
 0x19a   : > { %v543_v43 = vadd.f32 %v888_v41, %v1245_v56  ;;  %v623_v44 = vadd.f32 %v912_v42, %v1245_v56 }
 0x19b   : > { %v537_v45 = vpop.f32.mrf.mxu0  ;;  %v617_v46 = vpop.f32.mrf.mxu1 }
 0x19c   : > { %650 = vst.msk [vmem:[%s1250_s27 + $0x68] sm:$0xff] %vm636_vm1, %v543_v43  ;;  %666 = vst.msk [vmem:[%s1250_s27 + $0xe8] sm:$0xff] %vm636_vm1, %v623_v44  ;;  %v538_v47 = vadd.f32 %v1245_v56, %v537_v45  ;;  %v618_v48 = vadd.f32 %v1245_v56, %v617_v46 }
 0x19e   : > { %649 = vst.msk [vmem:[%s1250_s27 + $0x60] sm:$0xff] %vm636_vm1, %v538_v47  ;;  %665 = vst.msk [vmem:[%s1250_s27 + $0xe0] sm:$0xff] %vm636_vm1, %v618_v48 }
 0x1a1   : > { %v891_v49 = vpop.f32.mrf.mxu0  ;;  %v915_v50 = vpop.f32.mrf.mxu1 }
 0x1a2   : > { %v553_v51 = vadd.f32 %v891_v49, %v1245_v56  ;;  %v633_v52 = vadd.f32 %v915_v50, %v1245_v56 }
 0x1a3   : > { %v547_v53 = vpop.f32.mrf.mxu0  ;;  %v627_v54 = vpop.f32.mrf.mxu1 }
 0x1a4   : > { %652 = vst.msk [vmem:[%s1250_s27 + $0x78] sm:$0xff] %vm636_vm1, %v553_v51  ;;  %668 = vst.msk [vmem:[%s1250_s27 + $0xf8] sm:$0xff] %vm636_vm1, %v633_v52  ;;  %v548_v55 = vadd.f32 %v1245_v56, %v547_v53  ;;  %v628_v57 = vadd.f32 %v1245_v56, %v627_v54 }
 0x1a6   : > { %651 = vst.msk [vmem:[%s1250_s27 + $0x70] sm:$0xff] %vm636_vm1, %v548_v55  ;;  %667 = vst.msk [vmem:[%s1250_s27 + $0xf0] sm:$0xff] %vm636_vm1, %v628_v57 }
 0x1a7 PF: > { %s16_s17 = sadd.s32 1, %s1068_s17   ;;  %s1373_s12 = smov %s1052_s13 }
 0x1a8   : > { %p13_p8 = scmp.ge.s32.totalorder %s16_s17, 4   ;;  %s1374_s13 = smov %s1056_s14 }
 0x1a9   : > { %s1375_s14 = smov %s1142_s24  ;;  %s1376_s15 = smov %s1064_s16 }
 0x1aa   : > { %s1377_s16 = smov %s1379_s19  ;;  %15 = sbr.rel (!%p13_p8) target bundleno = 4 (0x4), region = 72 }
 0x1af   :  { %699 = vsyncpa [#allocation3], 1 }
 0x1b0   :  { %701 = vsyncpa [#allocation3 + $0x1], 1 }

</bundles_post_ra>
